<compile_context>
chip_gen: v7x
topology: tpu7x:2x2x1
jax: 0.10.0
libtpu: 0.0.40
codegen_flags: <defaults>
</compile_context>

<pallas_src>
import functools

import jax
import jax.numpy as jnp
from jax.experimental import pallas as pl
from jax.experimental.pallas import tpu as pltpu

_MiB = 1024 * 1024


def _round_up(x: int, m: int) -> int:
    return ((x + m - 1) // m) * m


def _chip_config():
    """Per-generation sizing.  v5e/v6e: 128 MiB VMEM, 1 TC.  v7x: 64 MiB/TC, 2 TCs."""
    vmem_cap = 0
    try:
        vmem_cap = int(getattr(pltpu.get_tpu_info(), "vmem_capacity_bytes", 0))
    except Exception:
        vmem_cap = 0  # unknown -> conservative (v7x-safe) defaults
    if vmem_cap > 64 * _MiB:
        # v5e / v6e: plenty of VMEM headroom, single TensorCore per chip.
        return dict(block_bytes=6 * _MiB, vmem_limit=64 * _MiB,
                    vmem_limit_max=100 * _MiB, multi_tc=False)
    # v7x-like (or unknown): 64 MiB per TensorCore, grid sharded over 2 TCs.
    return dict(block_bytes=4 * _MiB, vmem_limit=30 * _MiB,
                vmem_limit_max=56 * _MiB, multi_tc=(vmem_cap != 0))


def _tile_rows(n, c, itemsize, *, block_bytes, vmem_budget, row_output):
    """Row-tile size from bytes: logits HBM-block target + explicit VMEM budget."""
    row_align = max(8, 32 // itemsize)        # sublane packing: 8 f32 / 16 bf16 rows
    c_pad = _round_up(c, 128)                 # lane padding of the class axis
    hbm_row = c_pad * itemsize                # logits bytes per row (HBM block target)
    vmem_row = (2 * c_pad * itemsize          # logits block, double-buffered
                + 2 * 128 * 4                 # (tile_n,1) int32 targets, lane-padded, x2
                + 4 * c_pad * 4)              # whole-tile f32 intermediates headroom
    if row_output:
        vmem_row += 2 * 128 * 4               # (tile_n,1) f32 output (reduction='none')
    tile = min(block_bytes // hbm_row, vmem_budget // vmem_row)
    tile = max(row_align, (tile // row_align) * row_align)
    tile = min(tile, _round_up(n, row_align))
    return tile, row_align, vmem_row


def _focal_loss_kernel(logits_ref, targets_ref, out_ref, *, alpha, gamma,
                       n_rows, tile_n, reduce_in_kernel):
    """One row tile: per-row focal loss; per-tile partial sum for mean/sum."""
    x = logits_ref[...]
    if x.dtype != jnp.float32:
        x = x.astype(jnp.float32)                              # bf16 -> f32 in-register
    tgt = targets_ref[...]                                     # (TN, 1) int32
    tn, c = x.shape

    # Stable cross entropy, reusing z for both exp() and the target extraction:
    #   ce = logsumexp(x) - x[target] = log(sum(exp(z))) - z[target],  z = x - max
    m = jnp.max(x, axis=-1, keepdims=True)                     # (TN, 1)
    z = x - m                                                  # (TN, C)
    se = jnp.sum(jnp.exp(z), axis=-1, keepdims=True)           # (TN, 1)
    col = jax.lax.broadcasted_iota(jnp.int32, (tn, c), 1)      # class id per lane
    tgt_z = jnp.sum(jnp.where(col == tgt, z, 0.0), axis=-1, keepdims=True)
    ce = jnp.log(se) - tgt_z                                   # (TN, 1), >= 0

    pt = jnp.exp(-ce)
    omp = jnp.maximum(1.0 - pt, 0.0)                           # clamp: pow-path NaN guard

    g = float(gamma)
    if g == int(g) and 0 <= int(g) <= 8:
        # Integer gamma (default 2.0): VPU multiply chain, no EUP pow / 0**g edge case.
        weight = jnp.ones_like(omp)
        for _ in range(int(g)):
            weight = weight * omp
    else:
        weight = omp ** g

    fl = alpha * weight * ce                                   # (TN, 1)

    # Mask tail rows of a partial last tile (no host-side padding of logits).
    row = (pl.program_id(0) * tile_n
           + jax.lax.broadcasted_iota(jnp.int32, (tn, 1), 0))
    fl = jnp.where(row < n_rows, fl, 0.0)

    if reduce_in_kernel:
        partial = jnp.sum(fl)                                  # scalar per-tile partial
        out_ref[...] = jnp.broadcast_to(partial, out_ref.shape).astype(out_ref.dtype)
    else:
        out_ref[...] = fl.astype(out_ref.dtype)


def focal_loss(logits, targets, *, alpha=1.0, gamma=2.0, reduction="mean",
               block_bytes=None, vmem_limit_bytes=None):
    """Matches FocalLoss.forward for 2-D logits (N, C) and int class targets (N,)."""
    n, c = logits.shape
    cfg = _chip_config()
    if block_bytes is None:
        block_bytes = cfg["block_bytes"]
    vmem_limit = cfg["vmem_limit"] if vmem_limit_bytes is None else int(vmem_limit_bytes)
    itemsize = jnp.dtype(logits.dtype).itemsize
    reduce_in_kernel = reduction in ("mean", "sum")

    tile_n, row_align, vmem_row = _tile_rows(
        n, c, itemsize, block_bytes=block_bytes,
        vmem_budget=max(vmem_limit - 8 * _MiB, 4 * _MiB),
        row_output=not reduce_in_kernel)

    num_tiles = pl.cdiv(n, tile_n)
    if cfg["multi_tc"]:
        # v7x megacore: keep the parallel grid load-balanced across the 2 TensorCores.
        if num_tiles == 1 and n >= 2 * row_align:
            num_tiles = 2
        elif num_tiles % 2 == 1 and 3 <= num_tiles < 8:
            num_tiles += 1
        tile_n = max(row_align, _round_up(pl.cdiv(n, num_tiles), row_align))
        num_tiles = pl.cdiv(n, tile_n)

    if vmem_limit_bytes is None:
        # Minimum-size tiles for huge C can exceed the default scoped limit.
        est = tile_n * vmem_row + 2 * _MiB
        if est + 4 * _MiB > vmem_limit:
            vmem_limit = min(est + 8 * _MiB, cfg["vmem_limit_max"])

    targets2d = targets.astype(jnp.int32).reshape(n, 1)

    kernel = functools.partial(
        _focal_loss_kernel, alpha=float(alpha), gamma=float(gamma),
        n_rows=n, tile_n=tile_n, reduce_in_kernel=reduce_in_kernel)

    if reduce_in_kernel:
        # Tiny lane-dense, (8,128)-aligned per-tile partial sums (unmasked full vst);
        # no per-row HBM writeback at all for mean/sum.
        out_shape = jax.ShapeDtypeStruct((num_tiles, 8, 128), jnp.float32)
        out_spec = pl.BlockSpec((1, 8, 128), lambda i: (i, 0, 0))
    else:
        # TODO(synk): lane-dense (num_tiles, tile_n) output for reduction='none'
        # needs an in-kernel sublane->lane relayout of per-row losses; kept as a
        # column for compile robustness.
        out_shape = jax.ShapeDtypeStruct((n, 1), jnp.float32)
        out_spec = pl.BlockSpec((tile_n, 1), lambda i: (i, 0))

    out = pl.pallas_call(
        kernel,
        out_shape=out_shape,
        grid_spec=pltpu.PrefetchScalarGridSpec(
            num_scalar_prefetch=0,
            grid=(num_tiles,),
            in_specs=[
                pl.BlockSpec((tile_n, c), lambda i: (i, 0)),   # logits row tile
                pl.BlockSpec((tile_n, 1), lambda i: (i, 0)),   # targets row tile
            ],
            out_specs=out_spec,
        ),
        compiler_params=pltpu.CompilerParams(
            dimension_semantics=("parallel",),
            vmem_limit_bytes=int(vmem_limit)),
    )(logits, targets2d)

    if reduce_in_kernel:
        total = jnp.sum(out[:, 0, 0])
        return total / n if reduction == "mean" else total
    return out[:, 0]


def _focal_loss_ref(logits, targets, alpha=1.0, gamma=2.0, reduction="mean"):
    logits = logits.astype(jnp.float32)
    lse = jax.scipy.special.logsumexp(logits, axis=-1)
    tgt_logit = jnp.take_along_axis(
        logits, targets.astype(jnp.int32)[:, None], axis=-1)[:, 0]
    ce = lse - tgt_logit
    pt = jnp.exp(-ce)
    fl = alpha * (1.0 - pt) ** gamma * ce
    if reduction == "mean":
        return jnp.mean(fl)
    if reduction == "sum":
        return jnp.sum(fl)
    return fl


if __name__ == "__main__":
    key = jax.random.PRNGKey(0)
    k1, k2, k3, k4, k5, k6 = jax.random.split(key, 6)

    # Case 1: small f32 batch, default mean reduction (in-kernel partial sums).
    N, C = 16, 32
    logits = jax.random.normal(k1, (N, C), dtype=jnp.float32)
    targets = jax.random.randint(k2, (N,), 0, C, dtype=jnp.int32)
    out = jax.block_until_ready(focal_loss(logits, targets, alpha=1.0, gamma=2.0))
    ref = _focal_loss_ref(logits, targets, alpha=1.0, gamma=2.0)
    assert jnp.allclose(out, ref, rtol=1e-5, atol=1e-6), (out, ref)

    # Case 2: ragged batch + bf16 logits (upcast in-register), sum reduction.
    N2, C2 = 20, 48
    logits2 = jax.random.normal(k3, (N2, C2), dtype=jnp.bfloat16)
    targets2 = jax.random.randint(k4, (N2,), 0, C2, dtype=jnp.int32)
    out2 = jax.block_until_ready(
        focal_loss(logits2, targets2, alpha=0.5, gamma=2.0, reduction="sum"))
    ref2 = _focal_loss_ref(logits2, targets2, alpha=0.5, gamma=2.0, reduction="sum")
    assert jnp.allclose(out2, ref2, rtol=2e-5, atol=1e-5), (out2, ref2)

    # Case 3: reduction='none' with non-integer gamma (pow path + clamp), ragged N.
    N3, C3 = 17, 8
    logits3 = jax.random.normal(k5, (N3, C3), dtype=jnp.float32)
    targets3 = jax.random.randint(k6, (N3,), 0, C3, dtype=jnp.int32)
    out3 = jax.block_until_ready(
        focal_loss(logits3, targets3, alpha=1.0, gamma=1.5, reduction="none"))
    ref3 = _focal_loss_ref(logits3, targets3, alpha=1.0, gamma=1.5, reduction="none")
    assert out3.shape == (N3,)
    assert jnp.allclose(out3, ref3, rtol=1e-5, atol=1e-6), (out3, ref3)

    print("KERNEL_OK")
</pallas_src>

<mosaic_0001>
module attributes {stable_mosaic.version = 11 : i64} {
  func.func @_focal_loss_kernel(%arg0: i32, %arg1: memref<16x32xf32, #tpu.memory_space<vmem>>, %arg2: memref<16x1xi32, #tpu.memory_space<vmem>>, %arg3: memref<1x8x128xf32, #tpu.memory_space<vmem>>) attributes {dimension_semantics = [#tpu.dimension_semantics<parallel>], iteration_bounds = array<i64: 1>, scalar_prefetch = 0 : i64, scratch_operands = 0 : i64, tpu.core_type = #tpu.core_type<tc>, window_params = [{transform_indices = @transform_0, window_bounds = array<i64: 16, 32>}, {transform_indices = @transform_1, window_bounds = array<i64: 16, 1>}, {transform_indices = @transform_2, window_bounds = array<i64: 1, 8, 128>}]} {
    %c0 = arith.constant 0 : index
    %c0_0 = arith.constant 0 : index
    %0 = vector.load %arg1[%c0, %c0_0] : memref<16x32xf32, #tpu.memory_space<vmem>>, vector<16x32xf32>
    %c0_1 = arith.constant 0 : index
    %c0_2 = arith.constant 0 : index
    %1 = vector.load %arg2[%c0_1, %c0_2] : memref<16x1xi32, #tpu.memory_space<vmem>>, vector<16x1xi32>
    %cst = arith.constant dense<0xFF800000> : vector<16xf32>
    %2 = vector.multi_reduction <maximumf>, %0, %cst [1] : vector<16x32xf32> to vector<16xf32>
    %3 = vector.shape_cast %2 : vector<16xf32> to vector<16x1xf32>
    %4 = vector.broadcast %3 : vector<16x1xf32> to vector<16x32xf32>
    %5 = arith.subf %0, %4 : vector<16x32xf32>
    %6 = math.exp %5 : vector<16x32xf32>
    %cst_3 = arith.constant dense<0.000000e+00> : vector<16xf32>
    %7 = vector.multi_reduction <add>, %6, %cst_3 [1] : vector<16x32xf32> to vector<16xf32>
    %8 = vector.shape_cast %7 : vector<16xf32> to vector<16x1xf32>
    %9 = tpu.iota {dimensions = array<i32: 1>} : vector<16x32xi32>
    %10 = vector.broadcast %1 : vector<16x1xi32> to vector<16x32xi32>
    %11 = arith.cmpi eq, %9, %10 : vector<16x32xi32>
    %cst_4 = arith.constant 0.000000e+00 : f32
    %12 = vector.broadcast %cst_4 : f32 to vector<16x32xf32>
    %13 = arith.select %11, %5, %12 : vector<16x32xi1>, vector<16x32xf32>
    %cst_5 = arith.constant dense<0.000000e+00> : vector<16xf32>
    %14 = vector.multi_reduction <add>, %13, %cst_5 [1] : vector<16x32xf32> to vector<16xf32>
    %15 = vector.shape_cast %14 : vector<16xf32> to vector<16x1xf32>
    %16 = math.log %8 : vector<16x1xf32>
    %17 = arith.subf %16, %15 : vector<16x1xf32>
    %cst_6 = arith.constant 0.000000e+00 : f32
    %18 = vector.broadcast %cst_6 : f32 to vector<16x1xf32>
    %19 = arith.subf %18, %17 : vector<16x1xf32>
    %20 = math.exp %19 : vector<16x1xf32>
    %cst_7 = arith.constant 1.000000e+00 : f32
    %21 = vector.broadcast %cst_7 : f32 to vector<16x1xf32>
    %22 = arith.subf %21, %20 : vector<16x1xf32>
    %cst_8 = arith.constant 0.000000e+00 : f32
    %23 = vector.broadcast %cst_8 : f32 to vector<16x1xf32>
    %24 = arith.maximumf %22, %23 : vector<16x1xf32>
    %cst_9 = arith.constant 1.000000e+00 : f32
    %25 = vector.broadcast %cst_9 : f32 to vector<16x1xf32>
    %26 = arith.mulf %25, %24 : vector<16x1xf32>
    %27 = arith.mulf %26, %24 : vector<16x1xf32>
    %cst_10 = arith.constant 1.000000e+00 : f32
    %28 = vector.broadcast %cst_10 : f32 to vector<16x1xf32>
    %29 = arith.mulf %28, %27 : vector<16x1xf32>
    %30 = arith.mulf %29, %17 : vector<16x1xf32>
    %c16_i32 = arith.constant 16 : i32
    %31 = arith.muli %arg0, %c16_i32 : i32
    %32 = tpu.iota {dimensions = array<i32: 0>} : vector<16x1xi32>
    %33 = vector.broadcast %31 : i32 to vector<16x1xi32>
    %34 = arith.addi %33, %32 : vector<16x1xi32>
    %c16_i32_11 = arith.constant 16 : i32
    %35 = vector.broadcast %c16_i32_11 : i32 to vector<16x1xi32>
    %36 = arith.cmpi slt, %34, %35 : vector<16x1xi32>
    %cst_12 = arith.constant 0.000000e+00 : f32
    %37 = vector.broadcast %cst_12 : f32 to vector<16x1xf32>
    %38 = arith.select %36, %30, %37 : vector<16x1xi1>, vector<16x1xf32>
    %39 = vector.shape_cast %38 : vector<16x1xf32> to vector<1x16x1xf32>
    %cst_13 = arith.constant dense<0.000000e+00> : vector<1xf32>
    %40 = vector.multi_reduction <add>, %39, %cst_13 [1, 2] : vector<1x16x1xf32> to vector<1xf32>
    %41 = vector.shape_cast %40 : vector<1xf32> to vector<1x1x1xf32>
    %42 = vector.extract %41[0, 0, 0] : f32 from vector<1x1x1xf32>
    %43 = vector.broadcast %42 : f32 to vector<1x8x128xf32>
    %c0_14 = arith.constant 0 : index
    %c0_15 = arith.constant 0 : index
    %c0_16 = arith.constant 0 : index
    %44 = vector.load %arg3[%c0_14, %c0_15, %c0_16] : memref<1x8x128xf32, #tpu.memory_space<vmem>>, vector<1x8x128xf32>
    tpu.vector_store %arg3[%c0_14, %c0_15, %c0_16], %43 {strides = array<i32>} : memref<1x8x128xf32, #tpu.memory_space<vmem>>, vector<1x8x128xf32>,
    return
  }
  func.func @transform_0(%arg0: i32) -> (i32, i32) {
    %c0_i32 = arith.constant 0 : i32
    %c0_i32_0 = arith.constant 0 : i32
    return %arg0, %c0_i32 : i32, i32
  }
  func.func @transform_1(%arg0: i32) -> (i32, i32) {
    %c0_i32 = arith.constant 0 : i32
    %c0_i32_0 = arith.constant 0 : i32
    return %arg0, %c0_i32 : i32, i32
  }
  func.func @transform_2(%arg0: i32) -> (i32, i32, i32) {
    %c0_i32 = arith.constant 0 : i32
    %c0_i32_0 = arith.constant 0 : i32
    %c0_i32_1 = arith.constant 0 : i32
    return %arg0, %c0_i32, %c0_i32_0 : i32, i32, i32
  }
}

</mosaic_0001>

<bundles_post_ra>
// kernel: tpu_custom_call.1
= control target key start
LH: loop header
LB: loop body
LE: loop exit
PB: predicated region body
PF: predicated region fallthrough
CT: control target
= control target key end

     0   :  { %vm16_vm0 = vcmask 261120   ;;  %v155_v4 = vmov 0   ;;  %s202_s0 = inlined_call_operand.vmem [shape: f32[16,32], index: 0, kind: input, shape index: {}]   ;;  %s203_s1 = inlined_call_operand.vmem [shape: s32[16,1], index: 1, kind: input, shape index: {}]   ;;  %s204_s2 = inlined_call_operand.hbm [shape: f32[1,8,128], index: 2, kind: output, shape index: {}]  }
   0x1   :  { %v12_v0 = vld [vmem:[%s202_s0] sm:$0xff]  ;;  %v13_v1 = vld [vmem:[%s202_s0 + $0x8] sm:$0xff]  ;;  %117 = vset.pattern.permute.xlu1 %v155_v4  ;;  %118 = vset.pattern.permute.xlu0 %v155_v4 }
   0x2   :  { %v14_v2 = vld [vmem:[%s203_s1] sm:$0xff]  ;;  %v17_v3 = vsel %vm16_vm0, %v12_v0, -inf }
   0x3   :  { %7 = vsyncpa [#allocation3], 0  ;;  %18 = vmax.xlane.f32.xlu0 %v17_v3  ;;  %38 = vperm.xlu1 %117, %v14_v2   ;;  %v20_v5 = vsel %vm16_vm0, %v13_v1, -inf  ;;  %v15_v6 = vld [vmem:[%s203_s1 + $0x8] sm:$0xff]  ;;  %v35_v12 = vlaneseq  ;;  %vm84_vm3 = vcmask 7168   ;;  %s156_s0 = smov [#allocation2]  }
   0x4   :  { %s105_s1 = sshll.u32 %s156_s0, 4  ;;  %s106_s1 = int_to_ptr.vmem [resolvable:$true] %s105_s1 }
   0x5   :  { %v36_v15 = vand.u32 127, %v35_v12  ;;  %s131_s18 = scalar_lea.vmem %s106_s1, 128  ;;  %p136_p1 = scmp.lt.s32.totalorder %s106_s1, %s106_s1 }
   0x6   :  { %p132_p0 = scmp.ne.s32.totalorder %s106_s1, %s131_s18  ;;  %p137_p2 = scmp.lt.s32.totalorder %s131_s18, %s131_s18 }
   0x7   :  { %21 = vmax.xlane.f32.xlu0 %v20_v5  ;;  %41 = vperm.xlu1 %117, %v15_v6  }
   0x8   :  { %p138_p3 = por %p137_p2, %p136_p1 }
   0xa   :  { %p139_p4 = pnand %p138_p3, %p132_p0 }
  0x82   :  { %v39_v14 = vpop.permute.xlu1 %38 }
  0x83   :  { %vm43_vm1 = vcmp.eq.s32.totalorder %v36_v15, %v39_v14 }
  0x86   :  { %v42_v17 = vpop.permute.xlu1 %41 }
  0x87   :  { %vm44_vm2 = vcmp.eq.s32.totalorder %v36_v15, %v42_v17 }
  0x90   :  { %v19_v7 = vpop.xlane.xlu0 %18 }
  0x91   :  { %v23_v8 = vsub.f32 %v12_v0, %v19_v7 }
  0x93   :  { %v25_v9 = vmul.f32 1.442695, %v23_v8  ;;  %v45_v19 = vsel %vm43_vm1, %v23_v8, 0.0 }
  0x94   :  { %v22_v10 = vpop.xlane.xlu0 %21  ;;  %v47_v21 = vsel %vm16_vm0, %v45_v19, 0.0 }
  0x95   :  { %119 = vpow2.f32 %v25_v9  ;;  %v24_v11 = vsub.f32 %v13_v1, %v22_v10 }
  0x97   :  { %v27_v13 = vmul.f32 1.442695, %v24_v11  ;;  %v46_v23 = vsel %vm44_vm2, %v24_v11, 0.0 }
  0x98   :  { %v50_v24 = vsel %vm16_vm0, %v46_v23, 0.0 }
  0x99   :  { %121 = vpow2.f32 %v27_v13 }
  0x9f   :  { %v120_v16 = vpop.eup %119 }
  0xa0   :  { %v29_v18 = vsel %vm16_vm0, %v120_v16, 0.0 }
  0xa1   :  { %30 = vadd.xlane.f32.xlu0 %v29_v18 }
  0xa3   :  { %v122_v20 = vpop.eup %121 }
  0xa4   :  { %v32_v22 = vsel %vm16_vm0, %v122_v20, 0.0 }
  0xa5   :  { %48 = vadd.xlane.f32.xlu0 %v47_v21  ;;  %33 = vadd.xlane.f32.xlu1 %v32_v22 }
  0xa9   :  { %51 = vadd.xlane.f32.xlu0 %v50_v24 }
 0x12e   :  { %v31_v25 = vpop.xlane.xlu0 %30 }
 0x12f   :  { %123 = vlog2.f32 %v31_v25 }
 0x132   :  { %v34_v26 = vpop.xlane.xlu1 %33  ;;  %v49_v28 = vpop.xlane.xlu0 %48 }
 0x133   :  { %125 = vlog2.f32 %v34_v26 }
 0x136   :  { %v52_v34 = vpop.xlane.xlu0 %51 }
 0x139   :  { %v124_v27 = vpop.eup %123 }
 0x13a   :  { %v54_v29 = vmul.f32 0.6931472, %v124_v27 }
 0x13c   :  { %v57_v30 = vsub.f32 %v54_v29, %v49_v28 }
 0x13d   :  { %v126_v31 = vpop.eup %125 }
 0x13e   :  { %v59_v32 = vsub.f32 0.0, %v57_v30  ;;  %v56_v33 = vmul.f32 0.6931472, %v126_v31 }
 0x140   :  { %v61_v35 = vmul.f32 1.442695, %v59_v32  ;;  %v58_v36 = vsub.f32 %v56_v33, %v52_v34 }
 0x142   :  { %127 = vpow2.f32 %v61_v35  ;;  %v60_v37 = vsub.f32 0.0, %v58_v36 }
 0x144   :  { %v63_v38 = vmul.f32 1.442695, %v60_v37 }
 0x146   :  { %129 = vpow2.f32 %v63_v38 }
 0x14c   :  { %v128_v39 = vpop.eup %127 }
 0x14d   :  { %v65_v40 = vsub.f32 1.0, %v128_v39 }
 0x14f   :  { %v67_v41 = vmax.f32 %v65_v40, 0.0 }
 0x150   :  { %v130_v42 = vpop.eup %129 }
 0x151   :  { %v69_v43 = vmul.f32 %v67_v41, %v67_v41  ;;  %v66_v44 = vsub.f32 1.0, %v130_v42 }
 0x153   :  { %v68_v45 = vmax.f32 %v66_v44, 0.0  ;;  %v71_v46 = vmul.f32 %v69_v43, %v57_v30 }
 0x155   :  { %v70_v47 = vmul.f32 %v68_v45, %v68_v45  ;;  %v85_v49 = vsel %vm84_vm3, %v71_v46, 0.0 }
 0x157   :  { %v72_v48 = vmul.f32 %v70_v47, %v58_v36 }
 0x159   :  { %v86_v50 = vsel %vm84_vm3, %v72_v48, 0.0 }
 0x15a   :  { %v87_v51 = vadd.f32 %v86_v50, %v85_v49 }
 0x15c   :  { %88 = vadd.xlane.f32.xlu0 %v87_v51 }
 0x1e9   :  { %v89_v52 = vpop.xlane.xlu0 %88 }
 0x1ea   :  { %v90_v53 = vrot.slane %v89_v52, 4 }
 0x1ec   :  { %v91_v54 = vadd.f32 %v90_v53, %v89_v52 }
 0x1ee   :  { %v92_v55 = vrot.slane %v91_v54, 2 }
 0x1f0   :  { %v93_v56 = vadd.f32 %v92_v55, %v91_v54 }
 0x1f2   :  { %v94_v57 = vrot.slane %v93_v56, 1 }
 0x1f4   :  { %v95_v58 = vadd.f32 %v94_v57, %v93_v56 }
 0x1f6   :  { %113 = vpush %v95_v58 }
 0x227   :  { %s114_s17 = spop %113 }
 0x228   :  { %v97_v59 = vstv %s114_s17 }
 0x229   :  { %98 = vst [vmem:[#allocation2] sm:$0xff] %v97_v59 }
 0x22a   :  { %142 = shalt.err (!%p139_p4)
}
 0x22b   :  { %s143_s21 = scalar_lea.hbm %s204_s2, 128 }
 0x22c   :  { %p144_p5 = scmp.ne.s32.totalorder %s204_s2, %s143_s21  ;;  %p147_p6 = scmp.lt.u32.totalorder %s143_s21, %s204_s2 }
 0x22e   :  { %p149_p7 = pnand %p147_p6, %p144_p5 }
 0x230   :  { %152 = shalt.err (!%p149_p7)
}
 0x231   :  { %108 = dma.vmem_to_hbm [thread:$0]  %s106_s1, 128, %s204_s2, [#allocation3]  }
 0x232   :  { %153 = dma.done.wait [#allocation3], 128  }
 0x233   :  { %154 = vsyncadd [#allocation3], 4294967168 }
 0x234   :  { %112 = vsyncpa [#allocation3], 1 }

</bundles_post_ra>
